<compile_context>
chip_gen: v6e
topology: v6e:2x2x1
jax: 0.10.0
libtpu: 0.0.40
codegen_flags: <defaults>
</compile_context>

<pallas_src>
import functools

import jax
import jax.numpy as jnp
from jax.experimental import pallas as pl
from jax.experimental.pallas import tpu as pltpu


# ----------------------------------------------------------------------------
# Kernels
# ----------------------------------------------------------------------------
def _joints_mse_kernel_weighted(pred_ref, gt_ref, w_ref, out_ref, *,
                                tr, n_rows, masked):
    """One grid step = one (tr, P) row-tile; writes one (1, 1) partial sum."""
    diff = pred_ref[...].astype(jnp.float32) - gt_ref[...].astype(jnp.float32)
    w = w_ref[...].astype(jnp.float32)                       # (tr, 1)
    if masked:  # static branch: only emitted when the last tile is ragged
        row0 = pl.program_id(0) * tr
        rid = row0 + jax.lax.broadcasted_iota(jnp.int32, (tr, 1), 0)
        valid = rid < n_rows
        diff = jnp.where(valid, diff, 0.0)                   # mask BEFORE squaring
        w = jnp.where(valid, w, 0.0)                         # never 0 * garbage
    rows = jnp.sum(diff * diff, axis=1, keepdims=True)       # (tr, 1)
    out_ref[...] = jnp.sum(rows * (w * w)).reshape(1, 1)


def _joints_mse_kernel_unweighted(pred_ref, gt_ref, out_ref, *,
                                  tr, n_rows, masked):
    diff = pred_ref[...].astype(jnp.float32) - gt_ref[...].astype(jnp.float32)
    if masked:
        row0 = pl.program_id(0) * tr
        rid = row0 + jax.lax.broadcasted_iota(jnp.int32, (tr, 1), 0)
        valid = rid < n_rows
        diff = jnp.where(valid, diff, 0.0)
    out_ref[...] = jnp.sum(diff * diff).reshape(1, 1)


# ----------------------------------------------------------------------------
# Tiling helpers
# ----------------------------------------------------------------------------
def _round_up(x, m):
    return ((x + m - 1) // m) * m


def _vmem_limit_bytes():
    """Generation-aware scoped-VMEM limit: 96 MiB on v5e/v6e, 48 MiB on v7x."""
    cap = 64 * 1024 * 1024                      # conservative default (v7x per-TC)
    try:
        info = pltpu.get_tpu_info()
        cap = int(getattr(info, "vmem_capacity_bytes", cap)) or cap
    except Exception:
        pass
    return int(min((3 * cap) // 4, 96 * 1024 * 1024))


def _pick_row_tile(n_rows, rows_cap):
    """rows_cap: max rows per block allowed by the VMEM budget (mult of 8)."""
    if n_rows <= rows_cap:
        if n_rows >= 16:
            # Keep >= 2 grid steps so the "parallel" axis can shard across
            # v7x's two TensorCores and input DMAs overlap; blocks stay large.
            return min(rows_cap, _round_up((n_rows + 1) // 2, 8))
        return n_rows                           # single full-extent block
    return rows_cap


# ----------------------------------------------------------------------------
# Wrapper
# ----------------------------------------------------------------------------
def joints_mse_loss(output, target, target_weight=None, use_target_weight=True,
                    max_block_bytes=None):
    """Pallas implementation of JointsMSELoss.forward.

    output, target: (B, J, H, W) float arrays (NCHW heatmaps).
    target_weight : (B, J, 1) float array (only used if use_target_weight).
    max_block_bytes: optional per-heatmap-input block-size override (testing).
    Returns a scalar float32 loss.
    """
    B, J, H, W = output.shape
    P = H * W
    R = B * J

    # Free reshapes in the native layout -- no HBM transpose, no padding copy.
    pred = output.reshape(R, P)
    gt = target.reshape(R, P)

    pred_isz = jnp.dtype(output.dtype).itemsize
    gt_isz = jnp.dtype(target.dtype).itemsize
    vmem_limit = _vmem_limit_bytes()

    if max_block_bytes is None:
        # Bytes of one logical row resident in VMEM per buffer set:
        #   pred row + gt row (+ weight row, lane-padded to 128 lanes of f32).
        per_row = P * (pred_isz + gt_isz) + (128 * 4 if use_target_weight else 0)
        budget = vmem_limit - 2 * 1024 * 1024      # headroom: outputs, scratch
        rows_cap = budget // (2 * per_row)         # 2 = double buffering
    else:
        rows_cap = max_block_bytes // max(1, P * pred_isz)
    rows_cap = max(8, (rows_cap // 8) * 8)

    TR = _pick_row_tile(R, rows_cap)
    num_tiles = -(-R // TR)
    masked = (num_tiles * TR != R)                 # ragged last tile -> in-kernel mask
    scale = 0.5 / float(B * P * J)

    heat_spec = pl.BlockSpec((TR, P), lambda i: (i, 0))
    out_spec = pl.BlockSpec((1, 1), lambda i: (i, 0))
    cparams = pltpu.CompilerParams(
        dimension_semantics=("parallel",),         # distinct output block per step
        vmem_limit_bytes=vmem_limit,
    )

    if use_target_weight:
        w = target_weight.reshape(R, 1)
        kernel = functools.partial(_joints_mse_kernel_weighted,
                                   tr=TR, n_rows=R, masked=masked)
        partials = pl.pallas_call(
            kernel,
            out_shape=jax.ShapeDtypeStruct((num_tiles, 1), jnp.float32),
            grid=(num_tiles,),
            in_specs=[
                heat_spec,                                    # pred row-tile
                heat_spec,                                    # gt row-tile
                pl.BlockSpec((TR, 1), lambda i: (i, 0)),      # weights row-tile
            ],
            out_specs=out_spec,
            compiler_params=cparams,
        )(pred, gt, w)
    else:
        # Static branch: no weight input, no dead multiply.
        kernel = functools.partial(_joints_mse_kernel_unweighted,
                                   tr=TR, n_rows=R, masked=masked)
        partials = pl.pallas_call(
            kernel,
            out_shape=jax.ShapeDtypeStruct((num_tiles, 1), jnp.float32),
            grid=(num_tiles,),
            in_specs=[heat_spec, heat_spec],
            out_specs=out_spec,
            compiler_params=cparams,
        )(pred, gt)

    return jnp.sum(partials) * jnp.float32(scale)


# ----------------------------------------------------------------------------
# Pure-JAX reference (mirrors the PyTorch per-joint MSE loop exactly)
# ----------------------------------------------------------------------------
def _reference_loss(output, target, target_weight, use_target_weight):
    B, J = output.shape[0], output.shape[1]
    hp = output.reshape(B, J, -1)
    hg = target.reshape(B, J, -1)
    loss = 0.0
    for idx in range(J):
        p = hp[:, idx, :]
        g = hg[:, idx, :]
        if use_target_weight:
            wj = target_weight[:, idx]            # (B, 1)
            loss += 0.5 * jnp.mean((p * wj - g * wj) ** 2)
        else:
            loss += 0.5 * jnp.mean((p - g) ** 2)
    return loss / J


if __name__ == "__main__":
    key = jax.random.PRNGKey(0)
    k1, k2, k3 = jax.random.split(key, 3)

    # Small heatmap shapes consistent with the module's keypoint head.
    B, J, H, W = 2, 4, 16, 16
    output = jax.random.normal(k1, (B, J, H, W), dtype=jnp.float32)
    target = jax.random.normal(k2, (B, J, H, W), dtype=jnp.float32)
    target_weight = jax.random.uniform(k3, (B, J, 1), dtype=jnp.float32)

    # Weighted branch (single full-extent block, R=8 < 16).
    loss = jax.block_until_ready(
        joints_mse_loss(output, target, target_weight, use_target_weight=True))
    ref = _reference_loss(output, target, target_weight, True)
    assert jnp.allclose(loss, ref, rtol=1e-4, atol=1e-5), (loss, ref)

    # Unweighted branch (weight input dropped at trace time).
    loss_nw = jax.block_until_ready(
        joints_mse_loss(output, target, None, use_target_weight=False))
    ref_nw = _reference_loss(output, target, None, False)
    assert jnp.allclose(loss_nw, ref_nw, rtol=1e-4, atol=1e-5), (loss_nw, ref_nw)

    # Ragged multi-tile path: R=20 -> TR=16, 2 tiles, masked last tile.
    B2, J2 = 4, 5
    o2 = jax.random.normal(k1, (B2, J2, H, W), dtype=jnp.float32)
    t2 = jax.random.normal(k2, (B2, J2, H, W), dtype=jnp.float32)
    w2 = jax.random.uniform(k3, (B2, J2, 1), dtype=jnp.float32)
    ref2 = _reference_loss(o2, t2, w2, True)
    loss2 = jax.block_until_ready(
        joints_mse_loss(o2, t2, w2, use_target_weight=True))
    assert jnp.allclose(loss2, ref2, rtol=1e-4, atol=1e-5), (loss2, ref2)

    # Forced tiny block budget: TR=8, 3 tiles, 4 masked garbage rows.
    loss2s = jax.block_until_ready(
        joints_mse_loss(o2, t2, w2, use_target_weight=True,
                        max_block_bytes=8 * 1024))
    assert jnp.allclose(loss2s, ref2, rtol=1e-4, atol=1e-5), (loss2s, ref2)

    print("KERNEL_OK")
</pallas_src>

<mosaic_0001>
module attributes {stable_mosaic.version = 11 : i64} {
  func.func @_joints_mse_kernel_weighted(%arg0: i32, %arg1: memref<8x256xf32, #tpu.memory_space<vmem>>, %arg2: memref<8x256xf32, #tpu.memory_space<vmem>>, %arg3: memref<8x1xf32, #tpu.memory_space<vmem>>, %arg4: memref<1x1xf32, #tpu.memory_space<vmem>>) attributes {dimension_semantics = [#tpu.dimension_semantics<parallel>], iteration_bounds = array<i64: 1>, scalar_prefetch = 0 : i64, scratch_operands = 0 : i64, tpu.core_type = #tpu.core_type<tc>, window_params = [{transform_indices = @transform_0, window_bounds = array<i64: 8, 256>}, {transform_indices = @transform_1, window_bounds = array<i64: 8, 256>}, {transform_indices = @transform_2, window_bounds = array<i64: 8, 1>}, {transform_indices = @transform_3, window_bounds = array<i64: 1, 1>}]} {
    %c0 = arith.constant 0 : index
    %c0_0 = arith.constant 0 : index
    %0 = vector.load %arg1[%c0, %c0_0] : memref<8x256xf32, #tpu.memory_space<vmem>>, vector<8x256xf32>
    %c0_1 = arith.constant 0 : index
    %c0_2 = arith.constant 0 : index
    %1 = vector.load %arg2[%c0_1, %c0_2] : memref<8x256xf32, #tpu.memory_space<vmem>>, vector<8x256xf32>
    %2 = arith.subf %0, %1 : vector<8x256xf32>
    %c0_3 = arith.constant 0 : index
    %c0_4 = arith.constant 0 : index
    %3 = vector.load %arg3[%c0_3, %c0_4] : memref<8x1xf32, #tpu.memory_space<vmem>>, vector<8x1xf32>
    %4 = arith.mulf %2, %2 : vector<8x256xf32>
    %cst = arith.constant dense<0.000000e+00> : vector<8xf32>
    %5 = vector.multi_reduction <add>, %4, %cst [1] : vector<8x256xf32> to vector<8xf32>
    %6 = vector.shape_cast %5 : vector<8xf32> to vector<8x1xf32>
    %7 = arith.mulf %3, %3 : vector<8x1xf32>
    %8 = arith.mulf %6, %7 : vector<8x1xf32>
    %9 = vector.shape_cast %8 : vector<8x1xf32> to vector<1x8x1xf32>
    %cst_5 = arith.constant dense<0.000000e+00> : vector<1xf32>
    %10 = vector.multi_reduction <add>, %9, %cst_5 [1, 2] : vector<1x8x1xf32> to vector<1xf32>
    %11 = vector.shape_cast %10 : vector<1xf32> to vector<1x1x1xf32>
    %12 = vector.extract %11[0, 0, 0] : f32 from vector<1x1x1xf32>
    %13 = vector.broadcast %12 : f32 to vector<1x1xf32>
    %c0_6 = arith.constant 0 : index
    %c0_7 = arith.constant 0 : index
    %14 = vector.load %arg4[%c0_6, %c0_7] : memref<1x1xf32, #tpu.memory_space<vmem>>, vector<1x1xf32>
    tpu.vector_store %arg4[%c0_6, %c0_7], %13 {strides = array<i32>} : memref<1x1xf32, #tpu.memory_space<vmem>>, vector<1x1xf32>,
    return
  }
  func.func @transform_0(%arg0: i32) -> (i32, i32) {
    %c0_i32 = arith.constant 0 : i32
    %c0_i32_0 = arith.constant 0 : i32
    return %arg0, %c0_i32 : i32, i32
  }
  func.func @transform_1(%arg0: i32) -> (i32, i32) {
    %c0_i32 = arith.constant 0 : i32
    %c0_i32_0 = arith.constant 0 : i32
    return %arg0, %c0_i32 : i32, i32
  }
  func.func @transform_2(%arg0: i32) -> (i32, i32) {
    %c0_i32 = arith.constant 0 : i32
    %c0_i32_0 = arith.constant 0 : i32
    return %arg0, %c0_i32 : i32, i32
  }
  func.func @transform_3(%arg0: i32) -> (i32, i32) {
    %c0_i32 = arith.constant 0 : i32
    %c0_i32_0 = arith.constant 0 : i32
    return %arg0, %c0_i32 : i32, i32
  }
}

</mosaic_0001>

<bundles_post_ra>
// kernel: tpu_custom_call.1
= control target key start
LH: loop header
LB: loop body
LE: loop exit
PB: predicated region body
PF: predicated region fallthrough
CT: control target
= control target key end

     0   :  { %8 = vsyncpa [#allocation3], 0  ;;  %s189_s0 = inlined_call_operand.hbm [shape: f32[8,256], index: 0, kind: input, shape index: {}]   ;;  %s190_s1 = inlined_call_operand.hbm [shape: f32[8,256], index: 1, kind: input, shape index: {}]   ;;  %s191_s2 = inlined_call_operand.vmem [shape: f32[8,1], index: 2, kind: input, shape index: {}]   ;;  %s192_s3 = inlined_call_operand.hbm [shape: f32[1,1], index: 3, kind: output, shape index: {}]  }
   0x1   :  { %9 = vsyncpa [#allocation6], 0 }
   0x2   :  { %10 = vsyncpa [#allocation4], 0  ;;  %s154_s12 = smov [#allocation2]   ;;  %s155_s14 = smov [#allocation5]  }
   0x3   :  { %s17_s13 = sshll.u32 %s154_s12, 4  ;;  %s27_s15 = sshll.u32 %s155_s14, 4  ;;  %s18_s13 = int_to_ptr.vmem [resolvable:$true] %s17_s13  ;;  %s28_s15 = int_to_ptr.vmem [resolvable:$true] %s27_s15 }
   0x4   :  { %s96_s16 = scalar_lea.vmem %s18_s13, 256  ;;  %p101_p1 = scmp.lt.s32.totalorder %s18_s13, %s18_s13 }
   0x5   :  { %p97_p0 = scmp.ne.s32.totalorder %s18_s13, %s96_s16  ;;  %p102_p2 = scmp.lt.s32.totalorder %s96_s16, %s96_s16 }
   0x7   :  { %p103_p3 = por %p102_p2, %p101_p1 }
   0x9   :  { %p104_p4 = pnand %p103_p3, %p97_p0 }
   0xb   :  { %107 = shalt.err (!%p104_p4)
}
   0xc   :  { %20 = dma.hbm_to_vmem [thread:$0]  %s189_s0, 256, %s18_s13, [#allocation3]  }
   0xd   :  { %s116_s19 = scalar_lea.vmem %s28_s15, 256  ;;  %p121_p6 = scmp.lt.s32.totalorder %s28_s15, %s28_s15 }
   0xe   :  { %p117_p5 = scmp.ne.s32.totalorder %s28_s15, %s116_s19  ;;  %p122_p7 = scmp.lt.s32.totalorder %s116_s19, %s116_s19 }
  0x10   :  { %p123_p8 = por %p122_p7, %p121_p6 }
  0x12   :  { %p124_p9 = pnand %p123_p8, %p117_p5 }
  0x14   :  { %127 = shalt.err (!%p124_p9)
}
  0x15   :  { %30 = dma.hbm_to_vmem [thread:$0]  %s190_s1, 256, %s28_s15, [#allocation6]  }
  0x16   :  { %148 = dma.done.wait [#allocation3], 256  }
  0x17   :  { %149 = vsyncadd [#allocation3], 4294967040 }
  0x18   :  { %150 = dma.done.wait [#allocation6], 256  }
  0x19   :  { %151 = vsyncadd [#allocation6], 4294967040  ;;  %v39_v0 = vld [vmem:[#allocation2] sm:$0xff]  ;;  %v40_v1 = vld [vmem:[#allocation2 + $0x8] sm:$0xff]  ;;  %vm53_vm0 = vcmask 7168   ;;  %s156_s1 = smov [#allocation7]  }
  0x1a   :  { %v41_v2 = vld [vmem:[#allocation5] sm:$0xff]  ;;  %v42_v3 = vld [vmem:[#allocation5 + $0x8] sm:$0xff]  ;;  %v45_v9 = vld [vmem:[%s191_s2] sm:$0xff]  ;;  %s73_s23 = sshll.u32 %s156_s1, 4  ;;  %vm65_vm1 = vcmask 0   ;;  %s74_s23 = int_to_ptr.vmem [resolvable:$true] %s73_s23 }
  0x1b   :  { %v43_v4 = vsub.f32 %v39_v0, %v41_v2  ;;  %v44_v5 = vsub.f32 %v40_v1, %v42_v3  ;;  %v51_v10 = vmul.f32 %v45_v9, %v45_v9  ;;  %s128_s2 = scalar_lea.vmem %s74_s23, 16  ;;  %s132_s25 = scalar_lea.vmem %s74_s23, 32 }
  0x1c   :  { %p129_p10 = scmp.ne.s32.totalorder %s74_s23, %s128_s2  ;;  %p133_p11 = scmp.lt.s32.totalorder %s74_s23, %s74_s23 }
  0x1d   :  { %v46_v6 = vmul.f32 %v43_v4, %v43_v4  ;;  %v47_v7 = vmul.f32 %v44_v5, %v44_v5  ;;  %p134_p12 = scmp.lt.s32.totalorder %s132_s25, %s128_s2 }
  0x1f   :  { %v48_v8 = vadd.f32 %v47_v7, %v46_v6  ;;  %p135_p13 = por %p134_p12, %p133_p11 }
  0x21   :  { %49 = vadd.xlane.f32.xlu0 %v48_v8  ;;  %p136_p0 = pnand %p135_p13, %p129_p10 }
  0xaa   :  { %v50_v11 = vpop.xlane.xlu0 %49 }
  0xab   :  { %v52_v12 = vmul.f32 %v51_v10, %v50_v11 }
  0xad   :  { %v54_v13 = vsel %vm53_vm0, %v52_v12, 0.0 }
  0xae   :  { %55 = vadd.xlane.f32.xlu0 %v54_v13 }
 0x137   :  { %v56_v14 = vpop.xlane.xlu0 %55 }
 0x138   :  { %v57_v15 = vrot.slane %v56_v14, 4 }
 0x13a   :  { %v58_v16 = vadd.f32 %v57_v15, %v56_v14 }
 0x13c   :  { %v59_v17 = vrot.slane %v58_v16, 2 }
 0x13e   :  { %v60_v18 = vadd.f32 %v59_v17, %v58_v16 }
 0x140   :  { %v61_v19 = vrot.slane %v60_v18, 1 }
 0x142   :  { %v62_v20 = vadd.f32 %v61_v19, %v60_v18 }
 0x144   :  { %83 = vpush %v62_v20 }
 0x175   :  { %s84_s24 = spop %83 }
 0x176   :  { %v64_v21 = vstv %s84_s24 }
 0x177   :  { %66 = vst.msk [vmem:[#allocation7] sm:$0x1] %vm65_vm1, %v64_v21 }
 0x178   :  { %139 = shalt.err (!%p136_p0)
}
 0x179   :  { %76 = dma.vmem_to_hbm [thread:$0]  %s74_s23, 16, %s192_s3, [#allocation4]  }
 0x17a   :  { %152 = dma.done.wait [#allocation4], 16  }
 0x17b   :  { %153 = vsyncadd [#allocation4], 4294967280 }
 0x17c   :  { %80 = vsyncpa [#allocation3], 1 }
 0x17d   :  { %81 = vsyncpa [#allocation6], 1 }
 0x17e   :  { %82 = vsyncpa [#allocation4], 1 }

</bundles_post_ra>
